<compile_context>
chip_gen: v6e
topology: v6e:2x2x1
jax: 0.10.0
libtpu: 0.0.40
codegen_flags: <defaults>
</compile_context>

<pallas_src>
import math

import jax
import jax.numpy as jnp
from jax.experimental import pallas as pl
from jax.experimental.pallas import tpu as pltpu


def _round_up(x, m):
    return (x + m - 1) // m * m


def _cdiv(a, b):
    return (a + b - 1) // b


def _choose_tile(S, N, bytes_per_col, *, block_budget=10 << 20, ts_cap=8192,
                 min_grid_steps=2, ts_floor=512):
    """Pick the spatial tile (lane dim).

    (a) largest multiple of 128 that keeps live blocks + temporaries under
        `block_budget` bytes of VMEM (double-buffering included),
    (b) hard cap `ts_cap` (re-derived for v7x's smaller 64 MiB VMEM),
    (c) never exceeds the spatial extent S (avoids block > array-dim cases),
    (d) shrunk (in 128 steps, never below `ts_floor`) until the total grid has at
        least `min_grid_steps` steps so both v7x TensorCores get work.
    """
    if S <= 128:
        return S                              # single full-extent tile (always legal)
    ts = min(ts_cap, block_budget // max(bytes_per_col, 1), S)
    ts = max(128, ts // 128 * 128)            # lane-dense and <= S
    floor = min(ts, ts_floor)                 # below ~512 we fall off the HBM roofline
    while ts - 128 >= floor and N * _cdiv(S, ts) < min_grid_steps:
        ts -= 128
    return ts


# ---------------------------------------------------------------------------
# Fused kernel: conv1x1 -> +bias -> ReLU -> conv1x1 -> +bias -> sigmoid
# ---------------------------------------------------------------------------

def _attention_kernel(x_ref, w1_ref, b1_ref, w2_ref, b2_ref, o_ref):
    # x_ref : (C1, TS)   activation tile, spatial on lanes (batch dim squeezed away)
    # w1_ref: (Cmp, C1), b1_ref: (Cmp, 1) f32   -- fully VMEM-resident
    # w2_ref: (C2, Cmp), b2_ref: (C2, 1)  f32
    # o_ref : (C2, TS)   lane-dense output tile
    h = jnp.dot(w1_ref[...], x_ref[...], preferred_element_type=jnp.float32)
    h = jnp.maximum(h + b1_ref[...], 0.0)                       # bias + ReLU in f32
    a = jnp.dot(w2_ref[...], h.astype(w2_ref.dtype),
                preferred_element_type=jnp.float32) + b2_ref[...]
    # sigmoid(a) == 0.5 * tanh(a / 2) + 0.5  -> one EUP op (exp+divide would bind on v7x)
    o_ref[...] = (0.5 * jnp.tanh(0.5 * a) + 0.5).astype(o_ref.dtype)


def attention_layer(x, w1, b1, w2, b2, *, out_dtype=None):
    """x: (N, dim//2, D, H, W); w1: (dim//r, dim//2, 1,1,1); w2: (dim, dim//r, 1,1,1).

    Returns sigmoid(conv2(relu(conv1(x)))) with a trailing unsqueezed axis,
    i.e. shape (N, dim, D, H, W, 1) -- identical semantics to the PyTorch module.
    Accepts f32 or bf16 activations; output dtype follows the input unless overridden.
    """
    N, C1, D, H, W = x.shape
    Cm, C2 = w1.shape[0], w2.shape[0]
    assert w1.shape[1] == C1 and w2.shape[1] == Cm
    S = D * H * W
    out_dtype = x.dtype if out_dtype is None else out_dtype

    # NCDHW keeps spatial contiguous & last -> pure reshape, spatial maps to lanes.
    xr = x.reshape(N, C1, S)
    in_b = jnp.dtype(x.dtype).itemsize
    out_b = jnp.dtype(out_dtype).itemsize

    # Zero-pad the squeeze dim to a sublane multiple (exact: padded hidden channels
    # give relu(0)=0 and hit zero columns of w2). Weights-only, few KB.
    Cmp = _round_up(Cm, 8)
    wdt = x.dtype
    w1m = jnp.zeros((Cmp, C1), wdt).at[:Cm].set(w1.reshape(Cm, C1).astype(wdt))
    b1m = jnp.zeros((Cmp, 1), jnp.float32).at[:Cm, 0].set(b1.astype(jnp.float32))
    w2m = jnp.zeros((C2, Cmp), wdt).at[:, :Cm].set(w2.reshape(C2, Cm).astype(wdt))
    b2m = b2.reshape(C2, 1).astype(jnp.float32)

    # Live VMEM bytes per spatial column: double-buffered in/out blocks + temporaries.
    bytes_per_col = (2 * C1 * in_b + 2 * C2 * out_b            # pipelined blocks
                     + C1 * in_b + 2 * Cmp * 4 + 2 * C2 * 4)   # h, a, epilogue temps
    TS = _choose_tile(S, N, bytes_per_col)
    n_sp = _cdiv(S, TS)   # last tile may be partial: reads are column-independent,
                          # writes are masked -> exact result, no pad, no post-slice.

    cost = pl.CostEstimate(
        flops=2 * N * S * (C1 * Cmp + Cmp * C2),
        transcendentals=N * S * C2,
        bytes_accessed=(N * C1 * S * in_b + N * C2 * S * out_b
                        + (w1m.size + w2m.size) * in_b + (b1m.size + b2m.size) * 4),
    )

    out = pl.pallas_call(
        _attention_kernel,
        out_shape=jax.ShapeDtypeStruct((N, C2, S), out_dtype),
        grid=(N, n_sp),
        in_specs=[
            pl.BlockSpec((None, C1, TS), lambda n, s: (n, 0, s)),   # batch dim squeezed
            pl.BlockSpec((Cmp, C1), lambda n, s: (0, 0)),
            pl.BlockSpec((Cmp, 1), lambda n, s: (0, 0)),
            pl.BlockSpec((C2, Cmp), lambda n, s: (0, 0)),
            pl.BlockSpec((C2, 1), lambda n, s: (0, 0)),
        ],
        out_specs=pl.BlockSpec((None, C2, TS), lambda n, s: (n, 0, s)),
        compiler_params=pltpu.CompilerParams(
            dimension_semantics=("parallel", "parallel"),
            vmem_limit_bytes=32 * 1024 * 1024),
        cost_estimate=cost,
    )(xr, w1m, b1m, w2m, b2m)

    att = out.reshape(N, C2, D, H, W)   # pure reshape: no slice, no extra HBM copy
    return att[..., None]               # matches PyTorch .unsqueeze(-1)


# ---------------------------------------------------------------------------
# Pure-JAX reference (numerical verification only)
# ---------------------------------------------------------------------------

def attention_layer_ref(x, w1, b1, w2, b2):
    Cm, C1 = w1.shape[0], w1.shape[1]
    C2 = w2.shape[0]
    h = jnp.einsum("ncdhw,mc->nmdhw", x, w1.reshape(Cm, C1))
    h = jnp.maximum(h + b1[None, :, None, None, None], 0.0)
    a = jnp.einsum("ncdhw,mc->nmdhw", h, w2.reshape(C2, Cm))
    return jax.nn.sigmoid(a + b2[None, :, None, None, None])[..., None]


if __name__ == "__main__":
    key = jax.random.PRNGKey(0)
    k_x, k_w1, k_b1, k_w2, k_b2, k_x2 = jax.random.split(key, 6)

    # Attentionlayer(dim=64, r=16): layer1 = Conv3d(32 -> 4, k=1), layer2 = Conv3d(4 -> 64, k=1)
    dim, r = 64, 16
    N, D, H, W = 2, 8, 8, 8
    C1, Cm, C2 = dim // 2, dim // r, dim

    x = jax.random.normal(k_x, (N, C1, D, H, W), jnp.float32)
    w1 = jax.random.normal(k_w1, (Cm, C1, 1, 1, 1), jnp.float32) / math.sqrt(C1)
    b1 = jax.random.normal(k_b1, (Cm,), jnp.float32) * 0.1
    w2 = jax.random.normal(k_w2, (C2, Cm, 1, 1, 1), jnp.float32) / math.sqrt(Cm)
    b2 = jax.random.normal(k_b2, (C2,), jnp.float32) * 0.1

    fwd = jax.jit(attention_layer)

    # Test 1: spatial extent divisible by the tile (8*8*8 = 512).
    att = fwd(x, w1, b1, w2, b2)
    jax.block_until_ready(att)
    assert att.shape == (N, dim, D, H, W, 1), att.shape
    assert bool(jnp.all(jnp.isfinite(att)))
    ref = attention_layer_ref(x, w1, b1, w2, b2)
    max_err = float(jnp.max(jnp.abs(att - ref)))
    assert max_err < 2e-2, f"max abs error {max_err}"

    # Test 2: non-divisible spatial extent (6*6*6 = 216) exercises the masked
    # partial-tile path (no padding, no post-kernel slice).
    D2 = H2 = W2 = 6
    x2 = jax.random.normal(k_x2, (1, C1, D2, H2, W2), jnp.float32)
    att2 = jax.jit(attention_layer)(x2, w1, b1, w2, b2)
    jax.block_until_ready(att2)
    assert att2.shape == (1, dim, D2, H2, W2, 1), att2.shape
    ref2 = attention_layer_ref(x2, w1, b1, w2, b2)
    max_err2 = float(jnp.max(jnp.abs(att2 - ref2)))
    assert max_err2 < 2e-2, f"max abs error (partial tile) {max_err2}"

    print("KERNEL_OK")
</pallas_src>

<mosaic_0001>
module attributes {stable_mosaic.version = 11 : i64} {
  func.func @_attention_kernel(%arg0: i32, %arg1: i32, %arg2: memref<1x32x512xf32, #tpu.memory_space<vmem>>, %arg3: memref<8x32xf32, #tpu.memory_space<vmem>>, %arg4: memref<8x1xf32, #tpu.memory_space<vmem>>, %arg5: memref<64x8xf32, #tpu.memory_space<vmem>>, %arg6: memref<64x1xf32, #tpu.memory_space<vmem>>, %arg7: memref<1x64x512xf32, #tpu.memory_space<vmem>>) attributes {dimension_semantics = [#tpu.dimension_semantics<parallel>, #tpu.dimension_semantics<parallel>], iteration_bounds = array<i64: 2, 1>, scalar_prefetch = 0 : i64, scratch_operands = 0 : i64, tpu.core_type = #tpu.core_type<tc>, window_params = [{transform_indices = @transform_0, window_bounds = array<i64: 1, 32, 512>}, {pipeline_mode = #tpu.pipeline_mode<synchronous>, transform_indices = @transform_1, window_bounds = array<i64: 8, 32>}, {pipeline_mode = #tpu.pipeline_mode<synchronous>, transform_indices = @transform_2, window_bounds = array<i64: 8, 1>}, {pipeline_mode = #tpu.pipeline_mode<synchronous>, transform_indices = @transform_3, window_bounds = array<i64: 64, 8>}, {pipeline_mode = #tpu.pipeline_mode<synchronous>, transform_indices = @transform_4, window_bounds = array<i64: 64, 1>}, {transform_indices = @transform_5, window_bounds = array<i64: 1, 64, 512>}]} {
    %c0 = arith.constant 0 : index
    %c0_0 = arith.constant 0 : index
    %0 = vector.load %arg3[%c0, %c0_0] : memref<8x32xf32, #tpu.memory_space<vmem>>, vector<8x32xf32>
    %c0_1 = arith.constant 0 : index
    %c0_2 = arith.constant 0 : index
    %c0_3 = arith.constant 0 : index
    %1 = vector.load %arg2[%c0_1, %c0_2, %c0_3] : memref<1x32x512xf32, #tpu.memory_space<vmem>>, vector<1x32x512xf32>
    %2 = vector.shape_cast %1 : vector<1x32x512xf32> to vector<32x512xf32>
    %cst = arith.constant dense<0.000000e+00> : vector<8x512xf32>
    %3 = tpu.matmul %0, %2, %cst {dimension_numbers = #tpu.dot_dimension_numbers<[1], [0], [0], [1], [0, 0, 1, 1], [], []>} : vector<8x32xf32>, vector<32x512xf32>, vector<8x512xf32> -> vector<8x512xf32>
    %c0_4 = arith.constant 0 : index
    %c0_5 = arith.constant 0 : index
    %4 = vector.load %arg4[%c0_4, %c0_5] : memref<8x1xf32, #tpu.memory_space<vmem>>, vector<8x1xf32>
    %5 = vector.broadcast %4 : vector<8x1xf32> to vector<8x512xf32>
    %6 = arith.addf %3, %5 : vector<8x512xf32>
    %cst_6 = arith.constant 0.000000e+00 : f32
    %7 = vector.broadcast %cst_6 : f32 to vector<8x512xf32>
    %8 = arith.maximumf %6, %7 : vector<8x512xf32>
    %c0_7 = arith.constant 0 : index
    %c0_8 = arith.constant 0 : index
    %9 = vector.load %arg5[%c0_7, %c0_8] : memref<64x8xf32, #tpu.memory_space<vmem>>, vector<64x8xf32>
    %cst_9 = arith.constant dense<0.000000e+00> : vector<64x512xf32>
    %10 = tpu.matmul %9, %8, %cst_9 {dimension_numbers = #tpu.dot_dimension_numbers<[1], [0], [0], [1], [0, 0, 1, 1], [], []>} : vector<64x8xf32>, vector<8x512xf32>, vector<64x512xf32> -> vector<64x512xf32>
    %c0_10 = arith.constant 0 : index
    %c0_11 = arith.constant 0 : index
    %11 = vector.load %arg6[%c0_10, %c0_11] : memref<64x1xf32, #tpu.memory_space<vmem>>, vector<64x1xf32>
    %12 = vector.broadcast %11 : vector<64x1xf32> to vector<64x512xf32>
    %13 = arith.addf %10, %12 : vector<64x512xf32>
    %cst_12 = arith.constant 5.000000e-01 : f32
    %14 = vector.broadcast %cst_12 : f32 to vector<64x512xf32>
    %15 = arith.mulf %14, %13 : vector<64x512xf32>
    %16 = math.tanh %15 : vector<64x512xf32>
    %cst_13 = arith.constant 5.000000e-01 : f32
    %17 = vector.broadcast %cst_13 : f32 to vector<64x512xf32>
    %18 = arith.mulf %17, %16 : vector<64x512xf32>
    %cst_14 = arith.constant 5.000000e-01 : f32
    %19 = vector.broadcast %cst_14 : f32 to vector<64x512xf32>
    %20 = arith.addf %18, %19 : vector<64x512xf32>
    %c0_15 = arith.constant 0 : index
    %c0_16 = arith.constant 0 : index
    %c0_17 = arith.constant 0 : index
    %21 = vector.load %arg7[%c0_15, %c0_16, %c0_17] : memref<1x64x512xf32, #tpu.memory_space<vmem>>, vector<1x64x512xf32>
    %22 = vector.shape_cast %21 : vector<1x64x512xf32> to vector<64x512xf32>
    %23 = vector.shape_cast %20 : vector<64x512xf32> to vector<1x64x512xf32>
    tpu.vector_store %arg7[%c0_15, %c0_16, %c0_17], %23 {strides = array<i32>} : memref<1x64x512xf32, #tpu.memory_space<vmem>>, vector<1x64x512xf32>,
    return
  }
  func.func @transform_0(%arg0: i32, %arg1: i32) -> (i32, i32, i32) {
    %c0_i32 = arith.constant 0 : i32
    %c0_i32_0 = arith.constant 0 : i32
    return %arg0, %c0_i32, %arg1 : i32, i32, i32
  }
  func.func @transform_1(%arg0: i32, %arg1: i32) -> (i32, i32) {
    %c0_i32 = arith.constant 0 : i32
    %c0_i32_0 = arith.constant 0 : i32
    %c0_i32_1 = arith.constant 0 : i32
    return %c0_i32, %c0_i32_0 : i32, i32
  }
  func.func @transform_2(%arg0: i32, %arg1: i32) -> (i32, i32) {
    %c0_i32 = arith.constant 0 : i32
    %c0_i32_0 = arith.constant 0 : i32
    %c0_i32_1 = arith.constant 0 : i32
    return %c0_i32, %c0_i32_0 : i32, i32
  }
  func.func @transform_3(%arg0: i32, %arg1: i32) -> (i32, i32) {
    %c0_i32 = arith.constant 0 : i32
    %c0_i32_0 = arith.constant 0 : i32
    %c0_i32_1 = arith.constant 0 : i32
    return %c0_i32, %c0_i32_0 : i32, i32
  }
  func.func @transform_4(%arg0: i32, %arg1: i32) -> (i32, i32) {
    %c0_i32 = arith.constant 0 : i32
    %c0_i32_0 = arith.constant 0 : i32
    %c0_i32_1 = arith.constant 0 : i32
    return %c0_i32, %c0_i32_0 : i32, i32
  }
  func.func @transform_5(%arg0: i32, %arg1: i32) -> (i32, i32, i32) {
    %c0_i32 = arith.constant 0 : i32
    %c0_i32_0 = arith.constant 0 : i32
    return %arg0, %c0_i32, %arg1 : i32, i32, i32
  }
}

</mosaic_0001>

<bundles_post_ra>
// kernel: attention_layer.1
= control target key start
LH: loop header
LB: loop body
LE: loop exit
PB: predicated region body
PF: predicated region fallthrough
CT: control target
= control target key end

     0   :  { %s1170_s18 = smov 0   ;;  %s1172_s19 = smov 0   ;;  %s1329_s0 = inlined_call_operand.vmem [shape: f32[2,32,512], index: 0, kind: input, shape index: {}]   ;;  %s1330_s1 = inlined_call_operand.vmem [shape: f32[8,32], index: 1, kind: input, shape index: {}]   ;;  %s1331_s2 = inlined_call_operand.vmem [shape: f32[8,1], index: 2, kind: input, shape index: {}]   ;;  %s1332_s3 = inlined_call_operand.vmem [shape: f32[64,8], index: 3, kind: input, shape index: {}]   ;;  %s1333_s4 = inlined_call_operand.vmem [shape: f32[64,1], index: 4, kind: input, shape index: {}]   ;;  %s1334_s5 = inlined_call_operand.vmem [shape: f32[2,64,512], index: 5, kind: output, shape index: {}]  }
   0x1   :  { %s1174_s20 = smov 0  }
   0x2 LB: > { %s27_s21 = sadd.s32 1, %s1132_s19  ;;  %p995_p0 = scmp.ge.s32.totalorder %s1136_s20, 1  ;;  %s1136_s20 = sphi %s1174_s20, %s15_s20   ;;  %s1132_s19 = sphi %s1172_s19, %s1336_s19   ;;  %s1128_s18 = sphi %s1170_s18, %s1335_s18  }
   0x3   : > { %p29_p1 = scmp.ge.s32.totalorder %s27_s21, 2  ;;  %p208_p2 = scmp.lt.s32.totalorder %s1136_s20, 3 }
   0x5   : > { %s1338_s21 = smov (%p29_p1, %s27_s21), 0  ;;  %p209_p3 = pnand %p995_p0, %p208_p2 }
   0x6   : > { %p245_p4 = scmp.lt.s32.totalorder (!%p209_p3), %s1128_s18, 1 }
   0x7   : > { %212 = sbr.rel (%p209_p3) target bundleno = 478 (0x1de), region = 40 }
   0xc   : > { %v281_v0 = vld [vmem:[%s1331_s2] sm:$0xff]  ;;  %v1138_v1 = vmov 0.0   ;;  %s1340_s18 = smov (!%p245_p4, %s1128_s18), 1  ;;  %v1139_v2 = vmov 0   ;;  %vm287_vm0 = vcmask 261120   ;;  %v448_v21 = vld [vmem:[%s1333_s4 + $0x18] sm:$0xff] }
   0xd   : > { %355 = vmatprep.mubr.f32.mxu0 %v1138_v1  ;;  %426 = vmatprep.mubr.f32.mxu1 %v1138_v1  ;;  %s1020_s24 = sshll.u32 %s1340_s18, 7  ;;  %v264_v19 = vld [vmem:[%s1330_s1] sm:$0xff]  ;;  %v450_v22 = vld [vmem:[%s1333_s4 + $0x28] sm:$0xff]  ;;  %v452_v23 = vld [vmem:[%s1333_s4 + $0x38] sm:$0xff]  ;;  %vm493_vm1 = vcmask 64512   ;;  %s1021_s16 = sshll.u32 %s1340_s18, 8 }
   0xe   : > { %1048 = vset.pattern.permute.xlu0 %v1139_v2  ;;  %1049 = vset.pattern.permute.xlu1 %v1139_v2  ;;  %s252_s27 = scalar_lea.vmem %s1329_s0, %s1020_s24  ;;  %v445_v20 = vld [vmem:[%s1333_s4] sm:$0xff]  ;;  %v446_v24 = vld [vmem:[%s1333_s4 + $0x8] sm:$0xff]  ;;  %v447_v25 = vld [vmem:[%s1333_s4 + $0x10] sm:$0xff]  ;;  %s1286_s23 = scalar_lea.vmem %s1334_s5, %s1021_s16 }
   0xf   : > { %284 = vperm.xlu0 %1048, %v281_v0   ;;  %v278_v3 = vld [vmem:[%s252_s27 + $0x68] sm:$0xff]  ;;  %v280_v4 = vld [vmem:[%s252_s27 + $0x78] sm:$0xff]  ;;  %v277_v5 = vld [vmem:[%s252_s27 + $0x60] sm:$0xff]  ;;  %460 = vperm.xlu1 %1049, %v446_v24  }
  0x10   : > { %315 = vmatprep.subr.mxu0 %v278_v3  ;;  %386 = vmatprep.subr.mxu1 %v280_v4  ;;  %v279_v6 = vld [vmem:[%s252_s27 + $0x70] sm:$0xff]  ;;  %v274_v7 = vld [vmem:[%s252_s27 + $0x48] sm:$0xff]  ;;  %v276_v8 = vld [vmem:[%s252_s27 + $0x58] sm:$0xff] }
  0x11   : > { %316 = vmatpush1.msra.mxu0 %v277_v5  ;;  %387 = vmatpush1.msra.mxu1 %v279_v6  ;;  %v273_v9 = vld [vmem:[%s252_s27 + $0x40] sm:$0xff]  ;;  %v275_v10 = vld [vmem:[%s252_s27 + $0x50] sm:$0xff]  ;;  %v270_v11 = vld [vmem:[%s252_s27 + $0x28] sm:$0xff] }
  0x12   : > { %317 = vmatprep.subr.mxu0 %v274_v7  ;;  %388 = vmatprep.subr.mxu1 %v276_v8  ;;  %v272_v12 = vld [vmem:[%s252_s27 + $0x38] sm:$0xff]  ;;  %v269_v13 = vld [vmem:[%s252_s27 + $0x20] sm:$0xff]  ;;  %v271_v14 = vld [vmem:[%s252_s27 + $0x30] sm:$0xff] }
  0x13   : > { %318 = vmatpush1.msra.mxu0 %v273_v9  ;;  %389 = vmatpush1.msra.mxu1 %v275_v10  ;;  %v266_v15 = vld [vmem:[%s252_s27 + $0x8] sm:$0xff]  ;;  %v268_v16 = vld [vmem:[%s252_s27 + $0x18] sm:$0xff]  ;;  %v265_v17 = vld [vmem:[%s252_s27] sm:$0xff] }
  0x14   : > { %319 = vmatprep.subr.mxu0 %v270_v11  ;;  %390 = vmatprep.subr.mxu1 %v272_v12  ;;  %v267_v18 = vld [vmem:[%s252_s27 + $0x10] sm:$0xff]  ;;  %v449_v26 = vld [vmem:[%s1333_s4 + $0x20] sm:$0xff]  ;;  %v438_v42 = vld [vmem:[%s1332_s3 + $0x8] sm:$0xff] }
  0x15   : > { %320 = vmatpush1.msra.mxu0 %v269_v13  ;;  %391 = vmatpush1.msra.mxu1 %v271_v14  ;;  %v451_v27 = vld [vmem:[%s1333_s4 + $0x30] sm:$0xff]  ;;  %v437_v41 = vld [vmem:[%s1332_s3] sm:$0xff]  ;;  %v440_v44 = vld [vmem:[%s1332_s3 + $0x18] sm:$0xff] }
  0x16   : > { %321 = vmatprep.subr.mxu0 %v266_v15  ;;  %392 = vmatprep.subr.mxu1 %v268_v16  ;;  %v439_v43 = vld [vmem:[%s1332_s3 + $0x10] sm:$0xff]  ;;  %v441_v45 = vld [vmem:[%s1332_s3 + $0x20] sm:$0xff]  ;;  %v442_v46 = vld [vmem:[%s1332_s3 + $0x28] sm:$0xff] }
  0x17   : > { %322 = vmatpush1.msra.mxu0 %v265_v17  ;;  %393 = vmatpush1.msra.mxu1 %v267_v18  ;;  %v443_v47 = vld [vmem:[%s1332_s3 + $0x30] sm:$0xff]  ;;  %v444_v48 = vld [vmem:[%s1332_s3 + $0x38] sm:$0xff] }
  0x18   : > { %1000 = vmatmul.mubr.msk.f32.vlgmr.msra.gmra.mxu0 %vm287_vm0, %v264_v19  ;;  %1001 = vmatmul.mubr.msk.f32.vlgmr.msra.gmra.mxu1 %vm287_vm0, %v264_v19 }
  0x19   : > { %455 = vperm.xlu0 %1048, %v445_v20   ;;  %582 = vmatprep.mubr.f32.mxu0 %v1138_v1 }
  0x1a   : > { %695 = vmatprep.mubr.f32.mxu1 %v1138_v1  ;;  %465 = vperm.xlu1 %1049, %v447_v25  }
  0x1d   : > { %470 = vperm.xlu0 %1048, %v448_v21  }
  0x1e   : > { %475 = vperm.xlu1 %1049, %v449_v26  }
  0x21   : > { %480 = vperm.xlu0 %1048, %v450_v22  }
  0x22   : > { %485 = vperm.xlu1 %1049, %v451_v27  }
  0x25   : > { %490 = vperm.xlu0 %1048, %v452_v23  }
  0x8a   : > { %v285_v30 = vpop.permute.xlu0 %284  ;;  %v461_v50 = vpop.permute.xlu1 %460 }
  0x94   : > { %v456_v49 = vpop.permute.xlu0 %455 }
  0x95   : > { %v466_v2 = vpop.permute.xlu1 %465 }
  0x98   : > { %v471_v18 = vpop.permute.xlu0 %470 }
  0xd8   : > { %v357_v28 = vpop.f32.mrf.mxu0  ;;  %v428_v29 = vpop.f32.mrf.mxu1 }
  0xd9   : > { %v358_v31 = vadd.f32 %v357_v28, %v285_v30  ;;  %v429_v32 = vadd.f32 %v428_v29, %v285_v30 }
  0xda   : > { %v359_v33 = vpop.f32.mrf.mxu0  ;;  %v430_v34 = vpop.f32.mrf.mxu1 }
  0xdb   : > { %v360_v35 = vadd.f32 %v359_v33, %v285_v30  ;;  %v431_v36 = vadd.f32 %v430_v34, %v285_v30  ;;  %v433_v39 = vmax.f32 %v358_v31, 0.0  ;;  %v435_v40 = vmax.f32 %v429_v32, 0.0  ;;  %v476_v34 = vpop.permute.xlu1 %475 }
  0xdd   : > { %v434_v37 = vmax.f32 %v360_v35, 0.0  ;;  %v436_v38 = vmax.f32 %v431_v36, 0.0 }
  0xdf   : > { %548 = vmatprep.subr.mxu0 %v434_v37  ;;  %661 = vmatprep.subr.mxu1 %v436_v38 }
  0xe0   : > { %549 = vmatpush1.msra.mxu0 %v433_v39  ;;  %662 = vmatpush1.msra.mxu1 %v435_v40 }
  0xe1   : > { %1002 = vmatmul.mubr.msk.f32.vlgmr.msra.gmra.mxu0 %vm493_vm1, %v437_v41  ;;  %1010 = vmatmul.mubr.msk.f32.vlgmr.msra.gmra.mxu1 %vm493_vm1, %v437_v41 }
  0xe2   : > { %588 = vmatprep.mubr.f32.mxu0 %v1138_v1  ;;  %701 = vmatprep.mubr.f32.mxu1 %v1138_v1 }
  0xe5   : > { %1003 = vmatmul.mubr.msk.f32.gmra.mxu0 %vm493_vm1, %v438_v42  ;;  %1011 = vmatmul.mubr.msk.f32.gmra.mxu1 %vm493_vm1, %v438_v42 }
  0xe6   : > { %594 = vmatprep.mubr.f32.mxu0 %v1138_v1  ;;  %707 = vmatprep.mubr.f32.mxu1 %v1138_v1 }
  0xe9   : > { %1004 = vmatmul.mubr.msk.f32.gmra.mxu0 %vm493_vm1, %v439_v43  ;;  %1012 = vmatmul.mubr.msk.f32.gmra.mxu1 %vm493_vm1, %v439_v43 }
  0xea   : > { %600 = vmatprep.mubr.f32.mxu0 %v1138_v1  ;;  %713 = vmatprep.mubr.f32.mxu1 %v1138_v1 }
  0xed   : > { %1005 = vmatmul.mubr.msk.f32.gmra.mxu0 %vm493_vm1, %v440_v44  ;;  %1013 = vmatmul.mubr.msk.f32.gmra.mxu1 %vm493_vm1, %v440_v44 }
  0xee   : > { %606 = vmatprep.mubr.f32.mxu0 %v1138_v1  ;;  %719 = vmatprep.mubr.f32.mxu1 %v1138_v1 }
  0xf1   : > { %1006 = vmatmul.mubr.msk.f32.gmra.mxu0 %vm493_vm1, %v441_v45  ;;  %1014 = vmatmul.mubr.msk.f32.gmra.mxu1 %vm493_vm1, %v441_v45 }
  0xf2   : > { %612 = vmatprep.mubr.f32.mxu0 %v1138_v1  ;;  %725 = vmatprep.mubr.f32.mxu1 %v1138_v1 }
  0xf5   : > { %1007 = vmatmul.mubr.msk.f32.gmra.mxu0 %vm493_vm1, %v442_v46  ;;  %1015 = vmatmul.mubr.msk.f32.gmra.mxu1 %vm493_vm1, %v442_v46 }
  0xf6   : > { %618 = vmatprep.mubr.f32.mxu0 %v1138_v1  ;;  %731 = vmatprep.mubr.f32.mxu1 %v1138_v1 }
  0xf9   : > { %1008 = vmatmul.mubr.msk.f32.gmra.mxu0 %vm493_vm1, %v443_v47  ;;  %1016 = vmatmul.mubr.msk.f32.gmra.mxu1 %vm493_vm1, %v443_v47 }
  0xfa   : > { %624 = vmatprep.mubr.f32.mxu0 %v1138_v1  ;;  %737 = vmatprep.mubr.f32.mxu1 %v1138_v1 }
  0xfd   : > { %1009 = vmatmul.mubr.msk.f32.gmra.mxu0 %vm493_vm1, %v444_v48  ;;  %1017 = vmatmul.mubr.msk.f32.gmra.mxu1 %vm493_vm1, %v444_v48 }
 0x1a1   : > { %v584_v51 = vpop.f32.mrf.mxu0  ;;  %v697_v52 = vpop.f32.mrf.mxu1 }
 0x1a2   : > { %v585_v53 = vadd.f32 %v584_v51, %v456_v49  ;;  %v698_v54 = vadd.f32 %v697_v52, %v456_v49 }
 0x1a3   : > { %v586_v55 = vpop.f32.mrf.mxu0  ;;  %v699_v56 = vpop.f32.mrf.mxu1 }
 0x1a4   : > { %v744_v57 = vmul.f32 0.5, %v585_v53  ;;  %v746_v58 = vmul.f32 0.5, %v698_v54  ;;  %v587_v59 = vadd.f32 %v586_v55, %v456_v49  ;;  %v700_v60 = vadd.f32 %v699_v56, %v456_v49  ;;  %v481_v56 = vpop.permute.xlu0 %480 }
 0x1a5   : > { %v590_v61 = vpop.f32.mrf.mxu0  ;;  %v703_v62 = vpop.f32.mrf.mxu1 }
 0x1a6   : > { %1050 = vtanh.f32 %v744_v57  ;;  %v745_v63 = vmul.f32 0.5, %v587_v59  ;;  %v747_v0 = vmul.f32 0.5, %v700_v60  ;;  %v591_v1 = vadd.f32 %v590_v61, %v461_v50 }
 0x1a7   : > { %1052 = vtanh.f32 %v746_v58  ;;  %v592_v3 = vpop.f32.mrf.mxu0  ;;  %v705_v4 = vpop.f32.mrf.mxu1  ;;  %v704_v5 = vadd.f32 %v703_v62, %v461_v50 }
 0x1a8   : > { %1054 = vtanh.f32 %v745_v63  ;;  %v593_v6 = vadd.f32 %v592_v3, %v461_v50  ;;  %v706_v7 = vadd.f32 %v705_v4, %v461_v50  ;;  %v748_v8 = vmul.f32 0.5, %v591_v1 }
 0x1a9   : > { %1056 = vtanh.f32 %v747_v0  ;;  %v750_v9 = vmul.f32 0.5, %v704_v5  ;;  %v596_v10 = vpop.f32.mrf.mxu0  ;;  %v709_v11 = vpop.f32.mrf.mxu1 }
 0x1aa   : > { %v749_v12 = vmul.f32 0.5, %v593_v6  ;;  %v751_v13 = vmul.f32 0.5, %v706_v7  ;;  %1058 = vtanh.f32 %v748_v8  ;;  %v597_v14 = vadd.f32 %v596_v10, %v466_v2 }
 0x1ab   : > { %1060 = vtanh.f32 %v750_v9  ;;  %v598_v15 = vpop.f32.mrf.mxu0  ;;  %v711_v16 = vpop.f32.mrf.mxu1  ;;  %v710_v17 = vadd.f32 %v709_v11, %v466_v2 }
 0x1ac   : > { %1062 = vtanh.f32 %v749_v12  ;;  %v599_v19 = vadd.f32 %v598_v15, %v466_v2  ;;  %v712_v20 = vadd.f32 %v711_v16, %v466_v2  ;;  %v752_v21 = vmul.f32 0.5, %v597_v14 }
 0x1ad   : > { %1064 = vtanh.f32 %v751_v13  ;;  %v754_v22 = vmul.f32 0.5, %v710_v17  ;;  %v602_v23 = vpop.f32.mrf.mxu0  ;;  %v715_v24 = vpop.f32.mrf.mxu1 }
 0x1ae   : > { %v753_v25 = vmul.f32 0.5, %v599_v19  ;;  %v755_v26 = vmul.f32 0.5, %v712_v20  ;;  %1066 = vtanh.f32 %v752_v21  ;;  %v603_v27 = vadd.f32 %v602_v23, %v471_v18 }
 0x1af   : > { %1068 = vtanh.f32 %v754_v22  ;;  %v716_v28 = vadd.f32 %v715_v24, %v471_v18  ;;  %v604_v29 = vpop.f32.mrf.mxu0  ;;  %v717_v30 = vpop.f32.mrf.mxu1 }
 0x1b0   : > { %1070 = vtanh.f32 %v753_v25  ;;  %v756_v31 = vmul.f32 0.5, %v603_v27  ;;  %v605_v32 = vadd.f32 %v604_v29, %v471_v18  ;;  %v718_v33 = vadd.f32 %v717_v30, %v471_v18 }
 0x1b1   : > { %1072 = vtanh.f32 %v755_v26  ;;  %v758_v35 = vmul.f32 0.5, %v716_v28  ;;  %v608_v36 = vpop.f32.mrf.mxu0  ;;  %v721_v37 = vpop.f32.mrf.mxu1 }
 0x1b2   : > { %1074 = vtanh.f32 %v756_v31  ;;  %v757_v38 = vmul.f32 0.5, %v605_v32  ;;  %v759_v39 = vmul.f32 0.5, %v718_v33  ;;  %v609_v40 = vadd.f32 %v608_v36, %v476_v34  ;;  %v486_v31 = vpop.permute.xlu1 %485 }
 0x1b3   : > { %v1051_v41 = vpop.eup %1050  ;;  %1076 = vtanh.f32 %v758_v35  ;;  %v722_v42 = vadd.f32 %v721_v37, %v476_v34  ;;  %v610_v43 = vpop.f32.mrf.mxu0 }
 0x1b4   : > { %v723_v44 = vpop.f32.mrf.mxu1  ;;  %v1053_v45 = vpop.eup %1052  ;;  %v808_v46 = vmul.f32 0.5, %v1051_v41  ;;  %1078 = vtanh.f32 %v757_v38  ;;  %v760_v47 = vmul.f32 0.5, %v609_v40  ;;  %v611_v48 = vadd.f32 %v610_v43, %v476_v34 }
 0x1b5   : > { %v1055_v49 = vpop.eup %1054  ;;  %v810_v50 = vmul.f32 0.5, %v1053_v45  ;;  %1080 = vtanh.f32 %v759_v39  ;;  %v762_v51 = vmul.f32 0.5, %v722_v42  ;;  %v724_v52 = vadd.f32 %v723_v44, %v476_v34  ;;  %v614_v53 = vpop.f32.mrf.mxu0 }
 0x1b6   : > { %v727_v54 = vpop.f32.mrf.mxu1  ;;  %v1057_v55 = vpop.eup %1056  ;;  %v840_v57 = vadd.f32 0.5, %v808_v46  ;;  %v809_v58 = vmul.f32 0.5, %v1055_v49  ;;  %1082 = vtanh.f32 %v760_v47  ;;  %v761_v59 = vmul.f32 0.5, %v611_v48 }
 0x1b7   : > { %v1059_v60 = vpop.eup %1058  ;;  %v842_v61 = vadd.f32 0.5, %v810_v50  ;;  %v811_v62 = vmul.f32 0.5, %v1057_v55  ;;  %1084 = vtanh.f32 %v762_v51  ;;  %v763_v63 = vmul.f32 0.5, %v724_v52  ;;  %v616_v0 = vpop.f32.mrf.mxu0 }
 0x1b8   : > { %v729_v1 = vpop.f32.mrf.mxu1  ;;  %v1061_v2 = vpop.eup %1060  ;;  %872 = vst [vmem:[%s1286_s23] sm:$0xff] %v840_v57  ;;  %v841_v3 = vadd.f32 0.5, %v809_v58  ;;  %v812_v4 = vmul.f32 0.5, %v1059_v60  ;;  %1086 = vtanh.f32 %v761_v59  ;;  %v615_v5 = vadd.f32 %v614_v53, %v481_v56 }
 0x1b9   : > { %v1063_v6 = vpop.eup %1062  ;;  %874 = vst [vmem:[%s1286_s23 + $0x10] sm:$0xff] %v842_v61  ;;  %v843_v7 = vadd.f32 0.5, %v811_v62  ;;  %v814_v8 = vmul.f32 0.5, %v1061_v2  ;;  %1088 = vtanh.f32 %v763_v63  ;;  %v728_v9 = vadd.f32 %v727_v54, %v481_v56  ;;  %v620_v10 = vpop.f32.mrf.mxu0 }
 0x1ba   : > { %v733_v11 = vpop.f32.mrf.mxu1  ;;  %v1065_v12 = vpop.eup %1064  ;;  %873 = vst [vmem:[%s1286_s23 + $0x8] sm:$0xff] %v841_v3  ;;  %v813_v13 = vmul.f32 0.5, %v1063_v6  ;;  %v844_v14 = vadd.f32 0.5, %v812_v4  ;;  %v764_v15 = vmul.f32 0.5, %v615_v5  ;;  %v617_v16 = vadd.f32 %v616_v0, %v481_v56 }
 0x1bb   : > { %v1067_v17 = vpop.eup %1066  ;;  %875 = vst [vmem:[%s1286_s23 + $0x18] sm:$0xff] %v843_v7  ;;  %v815_v18 = vmul.f32 0.5, %v1065_v12  ;;  %v846_v19 = vadd.f32 0.5, %v814_v8  ;;  %v766_v20 = vmul.f32 0.5, %v728_v9  ;;  %v730_v21 = vadd.f32 %v729_v1, %v481_v56  ;;  %v622_v22 = vpop.f32.mrf.mxu0 }
 0x1bc   : > { %v1069_v23 = vpop.eup %1068  ;;  %v845_v24 = vadd.f32 0.5, %v813_v13  ;;  %876 = vst [vmem:[%s1286_s23 + $0x20] sm:$0xff] %v844_v14  ;;  %v816_v25 = vmul.f32 0.5, %v1067_v17  ;;  %1090 = vtanh.f32 %v764_v15  ;;  %v765_v26 = vmul.f32 0.5, %v617_v16  ;;  %v735_v27 = vpop.f32.mrf.mxu1 }
 0x1bd   : > { %v1071_v28 = vpop.eup %1070  ;;  %v847_v29 = vadd.f32 0.5, %v815_v18  ;;  %878 = vst [vmem:[%s1286_s23 + $0x30] sm:$0xff] %v846_v19  ;;  %v818_v30 = vmul.f32 0.5, %v1069_v23  ;;  %1092 = vtanh.f32 %v766_v20  ;;  %v767_v32 = vmul.f32 0.5, %v730_v21  ;;  %v626_v41 = vpop.f32.mrf.mxu0 }
 0x1be   : > { %v1073_v33 = vpop.eup %1072  ;;  %877 = vst [vmem:[%s1286_s23 + $0x28] sm:$0xff] %v845_v24  ;;  %v817_v34 = vmul.f32 0.5, %v1071_v28  ;;  %v848_v35 = vadd.f32 0.5, %v816_v25  ;;  %1094 = vtanh.f32 %v765_v26  ;;  %v621_v36 = vadd.f32 %v620_v10, %v486_v31  ;;  %v739_v47 = vpop.f32.mrf.mxu1 }
 0x1bf   : > { %v1075_v37 = vpop.eup %1074  ;;  %879 = vst [vmem:[%s1286_s23 + $0x38] sm:$0xff] %v847_v29  ;;  %v819_v38 = vmul.f32 0.5, %v1073_v33  ;;  %v850_v39 = vadd.f32 0.5, %v818_v30  ;;  %1096 = vtanh.f32 %v767_v32  ;;  %v734_v40 = vadd.f32 %v733_v11, %v486_v31  ;;  %v491_v58 = vpop.permute.xlu0 %490 }
 0x1c0   : > { %v1077_v42 = vpop.eup %1076  ;;  %v849_v43 = vadd.f32 0.5, %v817_v34  ;;  %880 = vst [vmem:[%s1286_s23 + $0x40] sm:$0xff] %v848_v35  ;;  %v820_v44 = vmul.f32 0.5, %v1075_v37  ;;  %v768_v45 = vmul.f32 0.5, %v621_v36  ;;  %v623_v46 = vadd.f32 %v622_v22, %v486_v31  ;;  %v628_v62 = vpop.f32.mrf.mxu0 }
 0x1c1   : > { %v1079_v48 = vpop.eup %1078  ;;  %v851_v49 = vadd.f32 0.5, %v819_v38  ;;  %882 = vst [vmem:[%s1286_s23 + $0x50] sm:$0xff] %v850_v39  ;;  %v822_v50 = vmul.f32 0.5, %v1077_v42  ;;  %v770_v51 = vmul.f32 0.5, %v734_v40  ;;  %v736_v52 = vadd.f32 %v735_v27, %v486_v31  ;;  %v741_v3 = vpop.f32.mrf.mxu1 }
 0x1c2   : > { %v1081_v53 = vpop.eup %1080  ;;  %881 = vst [vmem:[%s1286_s23 + $0x48] sm:$0xff] %v849_v43  ;;  %v852_v54 = vadd.f32 0.5, %v820_v44  ;;  %v821_v55 = vmul.f32 0.5, %v1079_v48  ;;  %1098 = vtanh.f32 %v768_v45  ;;  %v769_v56 = vmul.f32 0.5, %v623_v46 }
 0x1c3   : > { %v1083_v57 = vpop.eup %1082  ;;  %883 = vst [vmem:[%s1286_s23 + $0x58] sm:$0xff] %v851_v49  ;;  %v854_v59 = vadd.f32 0.5, %v822_v50  ;;  %v823_v60 = vmul.f32 0.5, %v1081_v53  ;;  %1100 = vtanh.f32 %v770_v51  ;;  %v771_v61 = vmul.f32 0.5, %v736_v52 }
 0x1c4   : > { %v1085_v63 = vpop.eup %1084  ;;  %884 = vst [vmem:[%s1286_s23 + $0x60] sm:$0xff] %v852_v54  ;;  %v853_v0 = vadd.f32 0.5, %v821_v55  ;;  %v824_v1 = vmul.f32 0.5, %v1083_v57  ;;  %1102 = vtanh.f32 %v769_v56  ;;  %v627_v2 = vadd.f32 %v626_v41, %v491_v58 }
 0x1c5   : > { %v1087_v4 = vpop.eup %1086  ;;  %886 = vst [vmem:[%s1286_s23 + $0x70] sm:$0xff] %v854_v59  ;;  %v855_v5 = vadd.f32 0.5, %v823_v60  ;;  %v826_v6 = vmul.f32 0.5, %v1085_v63  ;;  %1104 = vtanh.f32 %v771_v61  ;;  %v740_v7 = vadd.f32 %v739_v47, %v491_v58 }
 0x1c6   : > { %v1089_v8 = vpop.eup %1088  ;;  %885 = vst [vmem:[%s1286_s23 + $0x68] sm:$0xff] %v853_v0  ;;  %v856_v9 = vadd.f32 0.5, %v824_v1  ;;  %v825_v10 = vmul.f32 0.5, %v1087_v4  ;;  %v772_v11 = vmul.f32 0.5, %v627_v2  ;;  %v629_v12 = vadd.f32 %v628_v62, %v491_v58 }
 0x1c7   : > { %887 = vst [vmem:[%s1286_s23 + $0x78] sm:$0xff] %v855_v5  ;;  %v858_v13 = vadd.f32 0.5, %v826_v6  ;;  %v827_v14 = vmul.f32 0.5, %v1089_v8  ;;  %v774_v15 = vmul.f32 0.5, %v740_v7  ;;  %v742_v16 = vadd.f32 %v741_v3, %v491_v58 }
 0x1c8   : > { %888 = vst [vmem:[%s1286_s23 + $0x80] sm:$0xff] %v856_v9  ;;  %v857_v17 = vadd.f32 0.5, %v825_v10  ;;  %1106 = vtanh.f32 %v772_v11  ;;  %v773_v18 = vmul.f32 0.5, %v629_v12 }
 0x1c9   : > { %v1091_v19 = vpop.eup %1090  ;;  %890 = vst [vmem:[%s1286_s23 + $0x90] sm:$0xff] %v858_v13  ;;  %v859_v20 = vadd.f32 0.5, %v827_v14  ;;  %1108 = vtanh.f32 %v774_v15  ;;  %v775_v21 = vmul.f32 0.5, %v742_v16 }
 0x1ca   : > { %v1093_v22 = vpop.eup %1092  ;;  %889 = vst [vmem:[%s1286_s23 + $0x88] sm:$0xff] %v857_v17  ;;  %v828_v23 = vmul.f32 0.5, %v1091_v19  ;;  %1110 = vtanh.f32 %v773_v18 }
 0x1cb   : > { %v1095_v24 = vpop.eup %1094  ;;  %891 = vst [vmem:[%s1286_s23 + $0x98] sm:$0xff] %v859_v20  ;;  %v830_v25 = vmul.f32 0.5, %v1093_v22  ;;  %1112 = vtanh.f32 %v775_v21 }
 0x1cc   : > { %v1097_v26 = vpop.eup %1096  ;;  %v860_v27 = vadd.f32 0.5, %v828_v23  ;;  %v829_v28 = vmul.f32 0.5, %v1095_v24 }
 0x1cd   : > { %v862_v29 = vadd.f32 0.5, %v830_v25  ;;  %v831_v30 = vmul.f32 0.5, %v1097_v26 }
 0x1ce   : > { %892 = vst [vmem:[%s1286_s23 + $0xa0] sm:$0xff] %v860_v27  ;;  %v861_v31 = vadd.f32 0.5, %v829_v28 }
 0x1cf   : > { %v1099_v32 = vpop.eup %1098  ;;  %894 = vst [vmem:[%s1286_s23 + $0xb0] sm:$0xff] %v862_v29  ;;  %v863_v33 = vadd.f32 0.5, %v831_v30 }
 0x1d0   : > { %v1101_v34 = vpop.eup %1100  ;;  %893 = vst [vmem:[%s1286_s23 + $0xa8] sm:$0xff] %v861_v31  ;;  %v832_v35 = vmul.f32 0.5, %v1099_v32 }
 0x1d1   : > { %v1103_v36 = vpop.eup %1102  ;;  %895 = vst [vmem:[%s1286_s23 + $0xb8] sm:$0xff] %v863_v33  ;;  %v834_v37 = vmul.f32 0.5, %v1101_v34 }
 0x1d2   : > { %v1105_v38 = vpop.eup %1104  ;;  %v864_v39 = vadd.f32 0.5, %v832_v35  ;;  %v833_v40 = vmul.f32 0.5, %v1103_v36 }
 0x1d3   : > { %v866_v41 = vadd.f32 0.5, %v834_v37  ;;  %v835_v42 = vmul.f32 0.5, %v1105_v38 }
 0x1d4   : > { %896 = vst [vmem:[%s1286_s23 + $0xc0] sm:$0xff] %v864_v39  ;;  %v865_v43 = vadd.f32 0.5, %v833_v40 }
 0x1d5   : > { %v1107_v44 = vpop.eup %1106  ;;  %898 = vst [vmem:[%s1286_s23 + $0xd0] sm:$0xff] %v866_v41  ;;  %v867_v45 = vadd.f32 0.5, %v835_v42 }
 0x1d6   : > { %v1109_v46 = vpop.eup %1108  ;;  %897 = vst [vmem:[%s1286_s23 + $0xc8] sm:$0xff] %v865_v43  ;;  %v836_v47 = vmul.f32 0.5, %v1107_v44 }
 0x1d7   : > { %v1111_v48 = vpop.eup %1110  ;;  %899 = vst [vmem:[%s1286_s23 + $0xd8] sm:$0xff] %v867_v45  ;;  %v838_v49 = vmul.f32 0.5, %v1109_v46 }
 0x1d8   : > { %v1113_v50 = vpop.eup %1112  ;;  %v868_v51 = vadd.f32 0.5, %v836_v47  ;;  %v837_v52 = vmul.f32 0.5, %v1111_v48 }
 0x1d9   : > { %v870_v53 = vadd.f32 0.5, %v838_v49  ;;  %v839_v54 = vmul.f32 0.5, %v1113_v50 }
 0x1da   : > { %900 = vst [vmem:[%s1286_s23 + $0xe0] sm:$0xff] %v868_v51  ;;  %v869_v55 = vadd.f32 0.5, %v837_v52 }
 0x1db   : > { %902 = vst [vmem:[%s1286_s23 + $0xf0] sm:$0xff] %v870_v53  ;;  %v871_v56 = vadd.f32 0.5, %v839_v54 }
 0x1dc   : > { %901 = vst [vmem:[%s1286_s23 + $0xe8] sm:$0xff] %v869_v55 }
 0x1dd   : > { %903 = vst [vmem:[%s1286_s23 + $0xf8] sm:$0xff] %v871_v56 }
 0x1de PF: > { %s15_s20 = sadd.s32 1, %s1136_s20   ;;  %s1335_s18 = smov %s1132_s19 }
 0x1df   : > { %p12_p5 = scmp.ge.s32.totalorder %s15_s20, 4   ;;  %s1336_s19 = smov %s1338_s21 }
 0x1e1   :  { %14 = sbr.rel (!%p12_p5) target bundleno = 2 (0x2), region = 70 }

</bundles_post_ra>
